<compile_context>
chip_gen: v7x
topology: tpu7x:2x2x1
jax: 0.10.0
libtpu: 0.0.40
codegen_flags: <defaults>
</compile_context>

<pallas_src>
import jax
import jax.numpy as jnp
import numpy as np
from jax.experimental import pallas as pl
from jax.experimental.pallas import tpu as pltpu


def _rope_kernel(x_ref, cos_ref, sin_ref, o_ref):
    # x_ref: (1, H, L)  cos_ref/sin_ref: (H, L)  o_ref: (1, H, L)
    # L is the folded (seq_block * head_dim) axis; even/odd pairs are adjacent.
    x = x_ref[0].astype(jnp.float32)            # (H, L)
    c = cos_ref[...]                            # (H, L) f32
    s = sin_ref[...]                            # (H, L) f32, sign already folded
    H, L = x.shape
    # partner[j] = x[j+1] for even j, x[j-1] for odd j  (pairwise swap).
    # pltpu.roll matches jnp.roll semantics: roll(x, k)[j] = x[(j - k) % L].
    up = pltpu.roll(x, shift=L - 1, axis=1)     # up[j] = x[(j + 1) % L]
    dn = pltpu.roll(x, shift=1, axis=1)         # dn[j] = x[(j - 1) % L]
    lane = jax.lax.broadcasted_iota(jnp.int32, (H, L), 1)
    partner = jnp.where((lane % 2) == 0, up, dn)
    # out[2i]   = x[2i]*cos_i   + x[2i+1]*(-sin_i)
    # out[2i+1] = x[2i+1]*cos_i + x[2i]  *(+sin_i)
    o_ref[0] = (x * c + partner * s).astype(o_ref.dtype)


def build_rope_cache(num_heads: int, head_dim: int, max_seq_len: int = 256,
                     base: int = 10000):
    """Kernel-ready cache, precomputed once.

    Returns:
      cos_full:   [H, max_seq_len, head_dim] f32, cos repeated onto both pair slots.
      sin_signed: [H, max_seq_len, head_dim] f32, (-sin, +sin) interleaved.
    """
    dim = num_heads * head_dim           # matches module's view(1,S,H,Dh,2)
    half = dim // 2
    theta = 1.0 / (base ** (jnp.arange(0, dim, 2)[:half].astype(jnp.float32) / dim))
    seq_idx = jnp.arange(max_seq_len, dtype=jnp.float32)
    idx_theta = jnp.einsum("i,j->ij", seq_idx, theta)                 # [T, dim//2]
    cos = jnp.cos(idx_theta).reshape(max_seq_len, num_heads, head_dim // 2)
    sin = jnp.sin(idx_theta).reshape(max_seq_len, num_heads, head_dim // 2)
    cos = jnp.transpose(cos, (1, 0, 2))                               # [H, T, Dh]
    sin = jnp.transpose(sin, (1, 0, 2))                               # [H, T, Dh]
    cos_full = jnp.repeat(cos, 2, axis=-1)                            # [H, T, D]
    sin_signed = jnp.stack([-sin, sin], axis=-1).reshape(
        num_heads, max_seq_len, head_dim)                             # [H, T, D]
    return cos_full, sin_signed


def _choose_seq_block(S: int, D: int, H: int, itemsize: int,
                      max_block_bytes: int = 2 * 1024 * 1024) -> int:
    """Largest seq tile whose (H, s_blk*D) block fits the per-buffer budget."""
    bpe = max(int(itemsize), 4)                     # kernel math is f32
    if H * S * D * bpe <= max_block_bytes:
        return S
    limit = max(1, max_block_bytes // (H * D * bpe))
    for s_blk in range(min(S, limit), 0, -1):
        # sub-blocks must keep the folded lane axis a multiple of 128
        if S % s_blk == 0 and (s_blk * D) % 128 == 0:
            return s_blk
    return S


def rope_forward(x: jax.Array, cos_full: jax.Array, sin_signed: jax.Array) -> jax.Array:
    """x: [B, H, S, D] -> [B, H, S, D] with rotary embedding applied."""
    B, H, S, D = x.shape
    Hc, T, Dc = cos_full.shape
    if Hc != H or Dc != D:
        raise ValueError(f"cache built for (H={Hc}, D={Dc}), got (H={H}, D={D})")
    if S > T:
        raise ValueError(f"sequence length {S} exceeds max_seq_len {T}")
    if D % 2 != 0:
        raise ValueError("head_dim must be even")

    L_total = S * D
    s_blk = _choose_seq_block(S, D, H, x.dtype.itemsize)
    L_blk = s_blk * D

    # Free (contiguous-merge) reshapes: no data movement.
    xf = x.reshape(B, H, L_total)
    cos2 = cos_full.reshape(H, T * D)
    sin2 = sin_signed.reshape(H, T * D)

    # If the block can't tile the cache's folded axis under the lane rule,
    # slice the cache so the block equals its full extent (s_blk == S here).
    if (L_blk % 128 != 0) and (L_blk != T * D):
        cos2 = cos2[:, :L_total]
        sin2 = sin2[:, :L_total]

    n_s = S // s_blk
    grid = (n_s, B)                                  # batch innermost -> cache resident
    x_spec = pl.BlockSpec((1, H, L_blk), lambda s, b: (b, 0, s))
    cs_spec = pl.BlockSpec((H, L_blk), lambda s, b: (0, s))   # independent of b

    out = pl.pallas_call(
        _rope_kernel,
        out_shape=jax.ShapeDtypeStruct((B, H, L_total), x.dtype),
        grid_spec=pltpu.PrefetchScalarGridSpec(
            num_scalar_prefetch=0,
            grid=grid,
            in_specs=[x_spec, cs_spec, cs_spec],
            out_specs=x_spec,
        ),
        compiler_params=pltpu.CompilerParams(
            dimension_semantics=("parallel", "parallel"),
            vmem_limit_bytes=32 * 1024 * 1024,
        ),
    )(xf, cos2, sin2)

    return out.reshape(B, H, S, D)


def rope_reference(x: jax.Array, max_seq_len: int = 256, base: int = 10000) -> jax.Array:
    """Pure-JAX mirror of the PyTorch forward (including per-head freq slices)."""
    B, H, S, D = x.shape
    dim = H * D
    theta = 1.0 / (base ** (jnp.arange(0, dim, 2)[: dim // 2].astype(jnp.float32) / dim))
    seq_idx = jnp.arange(max_seq_len, dtype=jnp.float32)
    idx_theta = jnp.einsum("i,j->ij", seq_idx, theta)
    cache = jnp.stack([jnp.cos(idx_theta), jnp.sin(idx_theta)], axis=-1)   # [T, dim//2, 2]
    xp = jnp.transpose(x, (0, 2, 1, 3)).astype(jnp.float32)                # [B, S, H, D]
    xshaped = xp.reshape(B, S, H, D // 2, 2)
    rc = cache[:S].reshape(1, S, H, D // 2, 2)
    out = jnp.stack(
        [xshaped[..., 0] * rc[..., 0] - xshaped[..., 1] * rc[..., 1],
         xshaped[..., 1] * rc[..., 0] + xshaped[..., 0] * rc[..., 1]], axis=-1)
    out = out.reshape(B, S, H, D)
    return jnp.transpose(out, (0, 2, 1, 3)).astype(x.dtype)


if __name__ == "__main__":
    B, H, S, D = 2, 4, 8, 32
    key = jax.random.PRNGKey(0)
    x = jax.random.normal(key, (B, H, S, D), dtype=jnp.float32)

    cos_full, sin_signed = build_rope_cache(num_heads=H, head_dim=D,
                                            max_seq_len=256, base=10000)

    out = rope_forward(x, cos_full, sin_signed)
    out = jax.block_until_ready(out)

    ref = rope_reference(x, max_seq_len=256, base=10000)
    np.testing.assert_allclose(np.asarray(out), np.asarray(ref),
                               rtol=1e-5, atol=1e-5)
    assert out.shape == (B, H, S, D) and out.dtype == x.dtype
    print("KERNEL_OK")
</pallas_src>

<mosaic_0001>
module attributes {stable_mosaic.version = 11 : i64} {
  func.func @_rope_kernel(%arg0: i32, %arg1: i32, %arg2: memref<1x4x256xf32, #tpu.memory_space<vmem>>, %arg3: memref<4x256xf32, #tpu.memory_space<vmem>>, %arg4: memref<4x256xf32, #tpu.memory_space<vmem>>, %arg5: memref<1x4x256xf32, #tpu.memory_space<vmem>>) attributes {dimension_semantics = [#tpu.dimension_semantics<parallel>, #tpu.dimension_semantics<parallel>], iteration_bounds = array<i64: 1, 2>, scalar_prefetch = 0 : i64, scratch_operands = 0 : i64, tpu.core_type = #tpu.core_type<tc>, window_params = [{transform_indices = @transform_0, window_bounds = array<i64: 1, 4, 256>}, {transform_indices = @transform_1, window_bounds = array<i64: 4, 256>}, {transform_indices = @transform_2, window_bounds = array<i64: 4, 256>}, {transform_indices = @transform_3, window_bounds = array<i64: 1, 4, 256>}]} {
    %c0 = arith.constant 0 : index
    %c0_0 = arith.constant 0 : index
    %c0_1 = arith.constant 0 : index
    %0 = vector.load %arg2[%c0, %c0_0, %c0_1] : memref<1x4x256xf32, #tpu.memory_space<vmem>>, vector<1x4x256xf32>
    %1 = vector.shape_cast %0 : vector<1x4x256xf32> to vector<4x256xf32>
    %c0_2 = arith.constant 0 : index
    %c0_3 = arith.constant 0 : index
    %2 = vector.load %arg3[%c0_2, %c0_3] : memref<4x256xf32, #tpu.memory_space<vmem>>, vector<4x256xf32>
    %c0_4 = arith.constant 0 : index
    %c0_5 = arith.constant 0 : index
    %3 = vector.load %arg4[%c0_4, %c0_5] : memref<4x256xf32, #tpu.memory_space<vmem>>, vector<4x256xf32>
    %c255_i32 = arith.constant 255 : i32
    %4 = tpu.dynamic_rotate %1 by %c255_i32 dim 1 : vector<4x256xf32>, i32 -> vector<4x256xf32>
    %c1_i32 = arith.constant 1 : i32
    %5 = tpu.dynamic_rotate %1 by %c1_i32 dim 1 : vector<4x256xf32>, i32 -> vector<4x256xf32>
    %6 = tpu.iota {dimensions = array<i32: 1>} : vector<4x256xi32>
    %c2_i32 = arith.constant 2 : i32
    %c0_i32 = arith.constant 0 : i32
    %7 = arith.cmpi eq, %c2_i32, %c0_i32 : i32
    %c1_i32_6 = arith.constant 1 : i32
    %8 = arith.select %7, %c1_i32_6, %c2_i32 : i32
    %9 = vector.broadcast %8 : i32 to vector<4x256xi32>
    %10 = arith.remsi %6, %9 : vector<4x256xi32>
    %c0_i32_7 = arith.constant 0 : i32
    %11 = vector.broadcast %c0_i32_7 : i32 to vector<4x256xi32>
    %12 = arith.cmpi ne, %10, %11 : vector<4x256xi32>
    %c0_i32_8 = arith.constant 0 : i32
    %13 = vector.broadcast %c0_i32_8 : i32 to vector<4x256xi32>
    %14 = arith.cmpi slt, %10, %13 : vector<4x256xi32>
    %c0_i32_9 = arith.constant 0 : i32
    %15 = arith.cmpi slt, %8, %c0_i32_9 : i32
    %16 = vector.broadcast %15 : i1 to vector<4x256xi1>
    %17 = vector.broadcast %16 : vector<4x256xi1> to vector<4x256xi1>
    %18 = arith.xori %14, %17 : vector<4x256xi1>
    %19 = arith.andi %18, %12 : vector<4x256xi1>
    %20 = vector.broadcast %8 : i32 to vector<4x256xi32>
    %21 = arith.addi %10, %20 : vector<4x256xi32>
    %22 = arith.select %19, %21, %10 : vector<4x256xi1>, vector<4x256xi32>
    %c0_i32_10 = arith.constant 0 : i32
    %23 = vector.broadcast %c0_i32_10 : i32 to vector<4x256xi32>
    %24 = arith.cmpi eq, %22, %23 : vector<4x256xi32>
    %25 = arith.select %24, %4, %5 : vector<4x256xi1>, vector<4x256xf32>
    %26 = arith.mulf %1, %2 : vector<4x256xf32>
    %27 = arith.mulf %25, %3 : vector<4x256xf32>
    %28 = arith.addf %26, %27 : vector<4x256xf32>
    %c0_11 = arith.constant 0 : index
    %c0_12 = arith.constant 0 : index
    %c0_13 = arith.constant 0 : index
    %29 = vector.load %arg5[%c0_11, %c0_12, %c0_13] : memref<1x4x256xf32, #tpu.memory_space<vmem>>, vector<1x4x256xf32>
    %30 = vector.shape_cast %29 : vector<1x4x256xf32> to vector<4x256xf32>
    %31 = vector.shape_cast %28 : vector<4x256xf32> to vector<1x4x256xf32>
    tpu.vector_store %arg5[%c0_11, %c0_12, %c0_13], %31 {strides = array<i32>} : memref<1x4x256xf32, #tpu.memory_space<vmem>>, vector<1x4x256xf32>,
    return
  }
  func.func @transform_0(%arg0: i32, %arg1: i32) -> (i32, i32, i32) {
    %c0_i32 = arith.constant 0 : i32
    %c0_i32_0 = arith.constant 0 : i32
    return %arg1, %c0_i32, %arg0 : i32, i32, i32
  }
  func.func @transform_1(%arg0: i32, %arg1: i32) -> (i32, i32) {
    %c0_i32 = arith.constant 0 : i32
    %c0_i32_0 = arith.constant 0 : i32
    return %c0_i32, %arg0 : i32, i32
  }
  func.func @transform_2(%arg0: i32, %arg1: i32) -> (i32, i32) {
    %c0_i32 = arith.constant 0 : i32
    %c0_i32_0 = arith.constant 0 : i32
    return %c0_i32, %arg0 : i32, i32
  }
  func.func @transform_3(%arg0: i32, %arg1: i32) -> (i32, i32, i32) {
    %c0_i32 = arith.constant 0 : i32
    %c0_i32_0 = arith.constant 0 : i32
    return %arg1, %c0_i32, %arg0 : i32, i32, i32
  }
}

</mosaic_0001>

<bundles_post_ra>
// kernel: tpu_custom_call.1
= control target key start
LH: loop header
LB: loop body
LE: loop exit
PB: predicated region body
PF: predicated region fallthrough
CT: control target
= control target key end

     0   :  { %8 = vsyncpa [#allocation3], 0  ;;  %s998_s0 = inlined_call_operand.hbm [shape: f32[2,4,256], index: 0, kind: input, shape index: {}]   ;;  %s999_s1 = inlined_call_operand.hbm [shape: f32[4,8192], index: 1, kind: input, shape index: {}]   ;;  %s1000_s2 = inlined_call_operand.hbm [shape: f32[4,8192], index: 2, kind: input, shape index: {}]   ;;  %s1001_s3 = inlined_call_operand.hbm [shape: f32[2,4,256], index: 3, kind: output, shape index: {}]  }
   0x1   :  { %10 = vsyncpa [#allocation3 + $0x1], 0 }
   0x2   :  { %11 = vsyncpa [#allocation6], 0 }
   0x3   :  { %12 = vsyncpa [#allocation4], 0 }
   0x4   :  { %14 = vsyncpa [#allocation4 + $0x1], 0  ;;  %s745_s12 = smov 0   ;;  %s747_s13 = smov 0  }
   0x5   :  { %s749_s14 = smov 0   ;;  %s751_s15 = smov 0  }
   0x6   :  { %s753_s16 = smov 0   ;;  %s755_s17 = smov 0  }
   0x7 LB: > { %s437_s18 = sadd.s32 4294967295, %s717_s17   ;;  %s438_s19 = sadd.s32 4294967294, %s717_s17   ;;  %s717_s17 = sphi %s755_s17, %s20_s17   ;;  %s713_s16 = sphi %s753_s16, %s1024_s16   ;;  %s709_s15 = sphi %s751_s15, %s1023_s15   ;;  %s705_s14 = sphi %s749_s14, %s1022_s14   ;;  %s701_s13 = sphi %s747_s13, %s1021_s13   ;;  %s697_s12 = sphi %s745_s12, %s1020_s12  }
   0x8   : > { %p54_p0 = scmp.ne.s32.totalorder %s701_s13, %s697_s12  ;;  %p779_p1 = scmp.eq.s32.totalorder %s437_s18, 0 }
   0x9   : > { %p783_p2 = scmp.eq.s32.totalorder %s437_s18, 1  ;;  %p138_p3 = scmp.eq.s32.totalorder %s438_s19, 1 }
   0xa   : > { %s1006_s20 = scalar_select %p779_p1, 1, 0 }
   0xb   : > { %s1007_s21 = scalar_select %p783_p2, 1, 0 }
   0xc   : > { %p789_p4 = por %p779_p1, %p54_p0  ;;  %p439_p5 = scmp.ge.s32.totalorder %s717_s17, 1 }
   0xd   : > { %p794_p6 = por %p138_p3, %p54_p0  ;;  %p145_p7 = scmp.lt.s32.totalorder %s717_s17, 3 }
   0xe   : > { %s1008_s22 = scalar_select %p789_p4, 1, 0 }
   0xf   : > { %s1009_s23 = scalar_select %p794_p6, 1, 0 }
  0x10   : > { %p799_p8 = pnand %p439_p5, %p145_p7  ;;  %s719_s25 = smov [#allocation5]  }
  0x11   : > { %s161_s26 = sshll.u32 %s719_s25, 4  ;;  %s720_s27 = smov [#allocation7]   ;;  %s162_s26 = int_to_ptr.vmem [resolvable:$true] %s161_s26 }
  0x12   : > { %s1010_s24 = scalar_select %p799_p8, 1, 0 }
  0x13   : > { %p470_p10 = pneg %p799_p8  ;;  %s175_s28 = sshll.u32 %s720_s27, 4  ;;  %s812_s28 = int_to_ptr.vmem [resolvable:$true] %s175_s28 }
  0x14   : > { %s545_s5 = scalar_lea.hbm %s999_s1, 128  ;;  %s550_s10 = scalar_lea.hbm %s999_s1, 4096 }
  0x15   : > { %p808_p11 = pnand %p470_p10, %p779_p1  ;;  %p546_p12 = scmp.ne.s32.totalorder %s999_s1, %s545_s5 }
  0x16   : > { %p551_p5 = scmp.lt.u32.totalorder %s550_s10, %s545_s5  ;;  %p552_p7 = scmp.lt.u32.totalorder %s545_s5, %s999_s1 }
  0x17   : > { %p547_p13 = pneg %p808_p11 }
  0x18   : > { %p553_p10 = por %p552_p7, %p551_p5 }
  0x19   : > { %p548_p0 = pnand %p547_p13, %p546_p12 }
  0x1b   : > { %p549_p3 = pneg %p548_p0 }
  0x1d   : > { %p554_p9 = pnand %p553_p10, %p549_p3 }
  0x1f   : > { %557 = shalt.err (!%p554_p9)
}
  0x20   : > { %s558_s19 = scalar_lea.vmem %s162_s26, 128  ;;  %p566_p0 = scmp.lt.s32.totalorder %s162_s26, %s162_s26 }
  0x21   : > { %p559_p6 = scmp.ne.s32.totalorder %s162_s26, %s558_s19  ;;  %p567_p4 = scmp.lt.s32.totalorder %s558_s19, %s558_s19 }
  0x23   : > { %p561_p1 = pnand %p559_p6, %p547_p13  ;;  %p568_p8 = por %p567_p4, %p566_p0 }
  0x25   : > { %p562_p12 = pneg %p561_p1 }
  0x27   : > { %p569_p2 = pnand %p568_p8, %p562_p12 }
  0x29   : > { %572 = shalt.err (!%p569_p2)
}
  0x2a   : > { %473 = dma.hbm_to_vmem [thread:$0]  (!%p808_p11), %s999_s1, 128, %s162_s26, [#allocation6]  }
  0x2b   : > { %s573_s5 = scalar_lea.hbm %s1000_s2, 128  ;;  %s578_s10 = scalar_lea.hbm %s1000_s2, 4096 }
  0x2c   : > { %p574_p1 = scmp.ne.s32.totalorder %s1000_s2, %s573_s5  ;;  %p579_p2 = scmp.lt.u32.totalorder %s578_s10, %s573_s5 }
  0x2d   : > { %p580_p8 = scmp.lt.u32.totalorder %s573_s5, %s1000_s2 }
  0x2e   : > { %p576_p4 = pnand %p574_p1, %p547_p13 }
  0x2f   : > { %p581_p9 = por %p580_p8, %p579_p2 }
  0x30   : > { %p577_p6 = pneg %p576_p4 }
  0x32   : > { %p582_p3 = pnand %p581_p9, %p577_p6 }
  0x34   : > { %585 = shalt.err (!%p582_p3)
}
  0x35   : > { %s586_s26 = scalar_lea.vmem %s812_s28, 128  ;;  %p594_p12 = scmp.lt.s32.totalorder %s812_s28, %s812_s28 }
  0x36   : > { %p587_p5 = scmp.ne.s32.totalorder %s812_s28, %s586_s26  ;;  %p595_p0 = scmp.lt.s32.totalorder %s586_s26, %s586_s26 }
  0x38   : > { %p589_p7 = pnand %p587_p5, %p547_p13  ;;  %p596_p1 = por %p595_p0, %p594_p12 }
  0x3a   : > { %p590_p10 = pneg %p589_p7 }
  0x3c   : > { %p597_p4 = pnand %p596_p1, %p590_p10 }
  0x3e   : > { %600 = shalt.err (!%p597_p4)
}
  0x3f   : > { %476 = dma.hbm_to_vmem [thread:$0]  (!%p808_p11), %s1000_s2, 128, %s812_s28, [#allocation6]  }
  0x40   : > { %s29_s27 = sadd.s32 1, %s713_s16  ;;  %s41_s30 = sadd.s32 1, %s705_s14 }
  0x41   : > { %p30_p13 = scmp.ge.s32.totalorder %s29_s27, 2  ;;  %p48_p6 = scmp.ne.s32.totalorder %s705_s14, %s701_s13 }
  0x42   : > { %p49_p2 = scmp.eq.s32.totalorder %s717_s17, 0  ;;  %p487_p8 = scmp.lt.s32.totalorder %s717_s17, 2 }
  0x43   : > { %s1026_s27 = smov (%p30_p13, %s29_s27), 0  ;;  %p1012_p3 = scmp.ne.s32.totalorder %s1007_s21, 0 }
  0x44   : > { %p50_p9 = por %p49_p2, %p48_p6  ;;  %s36_s4 = ssub.s32 %s713_s16, %s1026_s27 }
  0x45   : > { %p877_p5 = por %p1012_p3, %p48_p6  ;;  %s186_s5 = sand.u32 1, %s705_s14  }
  0x46   : > { %p39_p7 = scmp.eq.s32.totalorder %s36_s4, 0  ;;  %s443_s28 = sshll.u32 %s186_s5, 3 }
  0x47   : > { %s456_s6 = sshll.u32 %s713_s16, 7  ;;  %s190_s21 = scalar_lea.vmem [#allocation2], %s443_s28 }
  0x48   : > { %s886_s7 = scalar_select %p39_p7, %s705_s14, %s41_s30  }
  0x49   : > { %s891_s10 = scalar_lea.hbm %s998_s0, %s456_s6  ;;  %s200_s11 = sshll.u32 %s190_s21, 4  ;;  %s899_s11 = int_to_ptr.vmem [resolvable:$true] %s200_s11 }
  0x4a   : > { %p895_p11 = pnand %p487_p8, %p50_p9  ;;  %s187_s26 = scalar_lea.sflag [#allocation3], %s186_s5 }
  0x4b   : > { %s601_s19 = scalar_lea.hbm %s891_s10, 128  ;;  %s606_s4 = scalar_lea.hbm %s998_s0, 256 }
  0x4c   : > { %p602_p10 = scmp.ne.s32.totalorder %s891_s10, %s601_s19  ;;  %p603_p12 = pneg %p895_p11 }
  0x4d   : > { %p607_p4 = scmp.lt.u32.totalorder %s891_s10, %s998_s0  ;;  %p608_p13 = scmp.lt.u32.totalorder %s606_s4, %s601_s19 }
  0x4e   : > { %p604_p0 = pnand %p603_p12, %p602_p10  ;;  %p610_p2 = scmp.lt.u32.totalorder %s601_s19, %s891_s10 }
  0x4f   : > { %p609_p6 = por %p608_p13, %p607_p4 }
  0x50   : > { %p605_p1 = pneg %p604_p0 }
  0x51   : > { %p611_p8 = por %p610_p2, %p609_p6 }
  0x53   : > { %p612_p9 = pnand %p611_p8, %p605_p1 }
  0x55   : > { %615 = shalt.err (!%p612_p9)
}
  0x56   : > { %s616_s5 = scalar_lea.vmem %s899_s11, 128  ;;  %s721_s8 = smov [#allocation2]  }
  0x57   : > { %p617_p3 = scmp.ne.s32.totalorder %s899_s11, %s616_s5  ;;  %s621_s9 = sshll.u32 %s721_s8, 4  ;;  %s622_s9 = int_to_ptr.vmem [resolvable:$false] %s621_s9 }
  0x58   : > { %s623_s21 = scalar_lea.vmem %s622_s9, 256  ;;  %p624_p0 = scmp.lt.s32.totalorder %s899_s11, %s622_s9 }
  0x59   : > { %p619_p7 = pnand %p617_p3, %p603_p12  ;;  %p625_p4 = scmp.lt.s32.totalorder %s623_s21, %s616_s5 }
  0x5b   : > { %p620_p10 = pneg %p619_p7  ;;  %p626_p13 = por %p625_p4, %p624_p0 }
  0x5d   : > { %p627_p6 = pnand %p626_p13, %p620_p10 }
  0x5f   : > { %630 = shalt.err (!%p627_p6)
}
  0x60   : > { %480 = dma.hbm_to_vmem [thread:$0]  (!%p895_p11), %s891_s10, 128, %s899_s11, %s187_s26  }
  0x61   : > { %p1015_p1 = scmp.ne.s32.totalorder %s1010_s24, 0 }
  0x62   : > { %s929_s19 = sand.u32 (!%p1015_p1), 1, %s701_s13   ;;  %p1016_p12 = scmp.ne.s32.totalorder (!%p1015_p1), %s1008_s22, 0 }
  0x63   : > { %209 = sbr.rel (%p1015_p1) target bundleno = 252 (0xfc), region = 32  ;;  %s447_s25 = sshll.u32 (!%p1015_p1), %s929_s19, 3 }
  0x64   : > { %s212_s30 = scalar_lea.sflag (!%p1015_p1), [#allocation3], %s929_s19  ;;  %s215_s4 = scalar_lea.vmem (!%p1015_p1), [#allocation2], %s447_s25 }
  0x6a   : > { %684 = dma.done.wait (%p1016_p12), %s212_s30, 128  }
  0x6b   : > { %686 = vsyncadd (%p1016_p12), %s212_s30, 4294967168  ;;  %p1017_p11 = scmp.ne.s32.totalorder %s1006_s20, 0 }
  0x6d   : > { %688 = dma.done.wait (%p1017_p11), [#allocation6], 256  }
  0x6e   : > { %690 = vsyncadd (%p1017_p11), [#allocation6], 4294967040  ;;  %v250_v0 = vld [vmem:[%s215_s4] sm:$0xff]  ;;  %s722_s24 = smov 1   ;;  %s723_s10 = smov 127   ;;  %v260_v2 = vlaneseq  ;;  %v252_v9 = vld [vmem:[#allocation7] sm:$0xff] }
  0x6f   : > { %265 = vrot.lane.b32.xlu1 %v250_v0, %s722_s24  ;;  %256 = vrot.lane.b32.xlu0 %v250_v0, %s723_s10  ;;  %v254_v1 = vcombine.high %v250_v0, %v250_v0  ;;  %v303_v10 = vcombine.high %v252_v9, %v252_v9  ;;  %v251_v11 = vld [vmem:[#allocation5] sm:$0xff]  ;;  %s457_s20 = sshll.u32 %s709_s15, 7  ;;  %s245_s22 = scalar_lea.vmem [#allocation8], %s447_s25 }
  0x70   : > { %v261_v3 = vand.u32 127, %v260_v2  ;;  %v301_v20 = vmul.f32 %v251_v11, %v250_v0  ;;  %s330_s11 = sshll.u32 %s245_s22, 4  ;;  %s949_s28 = scalar_lea.hbm %s1001_s3, %s457_s20  ;;  %s951_s11 = int_to_ptr.vmem [resolvable:$true] %s330_s11 }
  0x71   : > { %s314_s6 = scalar_lea.sflag [#allocation4], %s929_s19  ;;  %s631_s5 = scalar_lea.vmem %s951_s11, 128 }
  0x72   : > { %v272_v4 = vadd.s32 128, %v261_v3  ;;  %v277_v5 = vand.u32 1, %v261_v3  ;;  %vm269_vm0 = vcmp.lt.s32.totalorder %v261_v3, 1  ;;  %vm262_vm1 = vcmp.lt.s32.totalorder %v261_v3, 127  ;;  %p632_p2 = scmp.ne.s32.totalorder %s951_s11, %s631_s5  ;;  %s724_s15 = smov [#allocation8]  }
  0x73   : > { %267 = vrot.lane.b32.xlu1 %v254_v1, %s722_s24  ;;  %258 = vrot.lane.b32.xlu0 %v254_v1, %s723_s10  ;;  %s635_s8 = sshll.u32 %s724_s15, 4  ;;  %s636_s8 = int_to_ptr.vmem [resolvable:$false] %s635_s8 }
  0x74   : > { %v284_v6 = vand.u32 1, %v272_v4  ;;  %vm297_vm2 = vcmp.eq.s32.totalorder %v277_v5, 0  ;;  %p633_p8 = pnand %p632_p2, %p877_p5  ;;  %s637_s9 = scalar_lea.vmem %s636_s8, 256 }
  0x75   : > { %p638_p3 = scmp.lt.s32.totalorder %s951_s11, %s636_s8  ;;  %p639_p7 = scmp.lt.s32.totalorder %s637_s9, %s631_s5 }
  0x76   : > { %vm298_vm3 = vcmp.eq.s32.totalorder %v284_v6, 0  ;;  %p634_p9 = pneg %p633_p8 }
  0x77   : > { %p640_p10 = por %p639_p7, %p638_p3 }
  0x79   : > { %p641_p0 = pnand %p640_p10, %p634_p9 }
  0xe1   : > { %v266_v7 = vpop.permute.xlu1 %265  ;;  %v257_v8 = vpop.permute.xlu0 %256 }
  0xe5   : > { %v268_v12 = vpop.permute.xlu1 %267  ;;  %v259_v13 = vpop.permute.xlu0 %258 }
  0xe6   : > { %v270_v14 = vsel %vm269_vm0, %v266_v7, %v268_v12  ;;  %v271_v15 = vsel %vm269_vm0, %v268_v12, %v266_v7  ;;  %v263_v16 = vsel %vm262_vm1, %v257_v8, %v259_v13  ;;  %v264_v17 = vsel %vm262_vm1, %v259_v13, %v257_v8 }
  0xe7   : > { %v299_v18 = vsel %vm297_vm2, %v263_v16, %v271_v15  ;;  %v300_v19 = vsel %vm298_vm3, %v264_v17, %v270_v14 }
  0xe8   : > { %v305_v21 = vmul.f32 %v299_v18, %v252_v9  ;;  %v306_v22 = vmul.f32 %v303_v10, %v300_v19 }
  0xea   : > { %v309_v23 = vcombine.low %v305_v21, %v306_v22 }
  0xec   : > { %v311_v24 = vadd.f32 %v309_v23, %v301_v20 }
  0xee   : > { %312 = vst [vmem:[%s245_s22] sm:$0xff] %v311_v24 }
  0xef   : > { %644 = shalt.err (!%p641_p0)
}
  0xf0   : > { %s645_s21 = scalar_lea.hbm %s949_s28, 128  ;;  %s649_s30 = scalar_lea.hbm %s1001_s3, 256 }
  0xf1   : > { %p646_p4 = scmp.ne.s32.totalorder %s949_s28, %s645_s21  ;;  %p650_p1 = scmp.lt.u32.totalorder %s949_s28, %s1001_s3 }
  0xf2   : > { %p651_p12 = scmp.lt.u32.totalorder %s649_s30, %s645_s21  ;;  %p653_p2 = scmp.lt.u32.totalorder %s645_s21, %s949_s28 }
  0xf3   : > { %p647_p13 = pnand %p646_p4, %p877_p5 }
  0xf4   : > { %p652_p11 = por %p651_p12, %p650_p1 }
  0xf5   : > { %p648_p6 = pneg %p647_p13 }
  0xf6   : > { %p654_p8 = por %p653_p2, %p652_p11 }
  0xf8   : > { %p655_p9 = pnand %p654_p8, %p648_p6 }
  0xfa   : > { %658 = shalt.err (!%p655_p9)
}
  0xfb   : > { %468 = dma.vmem_to_hbm [thread:$0]  (%p877_p5), %s951_s11, 128, %s949_s28, %s314_s6  }
  0xfc PF: > { %s342_s10 = sand.u32 1, %s697_s12   ;;  %p1018_p3 = scmp.ne.s32.totalorder %s1009_s23, 0 }
  0xfd   : > { %p1019_p7 = scmp.ge.s32.totalorder %s717_s17, 2  ;;  %s343_s20 = scalar_lea.sflag [#allocation4], %s342_s10 }
  0xff   : > { %p482_p10 = pnand %p1019_p7, %p1018_p3 }
 0x101   : > { %692 = dma.done.wait (!%p482_p10), %s343_s20, 128  }
 0x102   : > { %694 = vsyncadd (!%p482_p10), %s343_s20, 4294967168  ;;  %s20_s17 = sadd.s32 1, %s717_s17   ;;  %s1020_s12 = smov %s701_s13 }
 0x103   : > { %p17_p0 = scmp.ge.s32.totalorder %s20_s17, 4   ;;  %s1021_s13 = smov %s705_s14 }
 0x104   : > { %s1022_s14 = smov %s886_s7  ;;  %s1023_s15 = smov %s713_s16 }
 0x105   : > { %s1024_s16 = smov %s1026_s27  ;;  %19 = sbr.rel (!%p17_p0) target bundleno = 7 (0x7), region = 87 }
 0x10c   :  { %348 = vsyncpa [#allocation3], 1 }
 0x10d   :  { %350 = vsyncpa [#allocation3 + $0x1], 1 }
 0x10e   :  { %351 = vsyncpa [#allocation6], 1 }
 0x10f   :  { %352 = vsyncpa [#allocation4], 1 }
 0x110   :  { %354 = vsyncpa [#allocation4 + $0x1], 1 }

</bundles_post_ra>
